<compile_context>
chip_gen: v5e
topology: v5e:2x2
jax: 0.10.0
libtpu: 0.0.40
codegen_flags: <defaults>
</compile_context>

<pallas_src>
import math

import jax
import jax.numpy as jnp
from jax import lax
from jax.experimental import pallas as pl
from jax.experimental.pallas import tpu as pltpu


# ----------------------------- configuration -------------------------------
B = 2            # batch
N = 8            # num_token
C = 16           # in_token_dims == out_token_dims (shortcut path active)
EXPANSION = 2
E = C * EXPANSION        # expanded dim e = 32
S = 32                   # self-attention feature dim s
EPS = 1e-5
SQRT_S = math.sqrt(S)
INV_SQRT_S = 1.0 / SQRT_S
SQRT_C = math.sqrt(C)
INV_EPS = 1.0 / EPS
BN = B * N


# ------------------------------- Pallas kernel ------------------------------
def rtmcc_kernel(x_ref, wuv_ref, gb_ref, bm_ref, wo_ref, rs_ref, out_ref):
    # x: (B*N, C) f32 -- batch flattened so every projection is one 2-D MXU dot.
    x = x_ref[...]

    # --- ScaleNorm: x / clamp(||x|| * C^-0.5, eps)  (ln_g folded into w_uv) --
    # 1/max(a, eps) == min(1/a, 1/eps) for a >= 0; rsqrt goes to the EUP slot.
    sq = jnp.sum(x * x, axis=-1, keepdims=True)            # (BN, 1)
    inv = jnp.minimum(lax.rsqrt(sq) * SQRT_C, INV_EPS)     # (BN, 1)
    xn = x * inv

    # --- fused uv projection (no bias, ln_g pre-folded) + single SiLU pass ---
    uv = jnp.dot(xn, wuv_ref[...],
                 preferred_element_type=jnp.float32)       # (BN, 2E+S) = (16, 96)
    uv = uv * jax.nn.sigmoid(uv)
    u = uv[:, :E]                                          # (BN, E)
    v = uv[:, E:2 * E]                                     # (BN, E)
    base = uv[:, 2 * E:]                                   # (BN, S)

    # --- q, k: per-head affine (1/sqrt(S) pre-folded into q-side rows) -------
    gb = gb_ref[...]                                       # (4, S): gq, bq, gk, bk
    q = base * gb[0:1, :] + gb[1:2, :]                     # (BN, S)
    k = base * gb[2:3, :] + gb[3:4, :]                     # (BN, S)

    # --- block-diagonal attention in one pair of MXU dots --------------------
    bias = bm_ref[0]                                       # (BN, BN), pre-scaled
    mask = bm_ref[1]                                       # (BN, BN), 0/1 block-diag
    qk = jnp.einsum('ns,ms->nm', q, k,
                    preferred_element_type=jnp.float32) + bias
    kern = jnp.square(jnp.maximum(qk, 0.0)) * mask         # relu(qk/sqrt(S))^2, masked
    agg = jnp.dot(kern, v, preferred_element_type=jnp.float32)   # (BN, E)

    # --- gated output projection (flattened, shared weight) ------------------
    gated = u * agg                                        # (BN, E)
    o = jnp.dot(gated, wo_ref[...], preferred_element_type=jnp.float32)  # (BN, C)

    # --- residual: res_scale(x) + main_branch --------------------------------
    out_ref[...] = x * rs_ref[...] + o


# ------------------------------- wrapper ------------------------------------
def rtmcc_block(x, params):
    """RTMCCBlock forward. x: (B, N, C) float32 -> (B, N, C) float32."""
    # ---- parameter plumbing (glue, outside the hot path) --------------------
    w = params['w']                                        # (2N - 1,)
    idx = jnp.arange(N)
    bias_mat = w[idx[None, :] - idx[:, None] + N - 1]      # (N, N) Toeplitz
    bias_scaled = bias_mat * INV_SQRT_S                    # fold 1/sqrt(S)

    # Block-diagonal (BN, BN) bias and 0/1 mask (mask applied after relu^2,
    # so off-block bias entries are simply zero -- no -inf, no NaN risk).
    eye_b = jnp.eye(B, dtype=jnp.float32)
    bias_bd = jnp.kron(eye_b, bias_scaled)                 # (BN, BN)
    mask_bd = jnp.kron(eye_b, jnp.ones((N, N), jnp.float32))
    bias_mask = jnp.stack([bias_bd, mask_bd], axis=0)      # (2, BN, BN)

    # Fold scalar ln_g into the uv weight (projection is linear in xn).
    wuv_g = params['w_uv'] * params['ln_g'][0, 0]          # (C, 2E + S)

    gamma, beta = params['gamma'], params['beta']          # (2, S) each
    gb = jnp.stack([gamma[0] * INV_SQRT_S,                 # gq (1/sqrt(S) fold)
                    beta[0] * INV_SQRT_S,                  # bq
                    gamma[1],                              # gk
                    beta[1]], axis=0)                      # bk -> (4, S)

    x_flat = x.reshape(BN, C)                              # flatten batch

    vmem = pl.BlockSpec(memory_space=pltpu.MemorySpace.VMEM)

    out_flat = pl.pallas_call(
        rtmcc_kernel,
        out_shape=jax.ShapeDtypeStruct((BN, C), jnp.float32),
        in_specs=[vmem] * 6,
        out_specs=vmem,
    )(x_flat,
      wuv_g,                  # (C, 2E+S)
      gb,                     # (4, S)
      bias_mask,              # (2, BN, BN)
      params['w_o'],          # (E, C)
      params['res_scale'])    # (1, C)
    return out_flat.reshape(B, N, C)


# --------------------------- pure-JAX reference -----------------------------
def rtmcc_reference(x, params):
    w = params['w']
    idx = jnp.arange(N)
    bias_mat = w[idx[None, :] - idx[:, None] + N - 1]

    norm = jnp.linalg.norm(x, axis=-1, keepdims=True) * (C ** -0.5)
    xn = x / jnp.maximum(norm, EPS) * params['ln_g'][0, 0]
    uv = xn @ params['w_uv']
    uv = uv * jax.nn.sigmoid(uv)
    u, v, base = uv[..., :E], uv[..., E:2 * E], uv[..., 2 * E:]
    q = base * params['gamma'][0] + params['beta'][0]
    k = base * params['gamma'][1] + params['beta'][1]
    qk = jnp.einsum('bns,bms->bnm', q, k) + bias_mat[None]
    kern = jnp.square(jax.nn.relu(qk / SQRT_S))
    o = (u * jnp.einsum('bnm,bme->bne', kern, v)) @ params['w_o']
    return x * params['res_scale'] + o


# --------------------------------- main --------------------------------------
if __name__ == "__main__":
    key = jax.random.PRNGKey(0)
    ks = jax.random.split(key, 8)

    x = jax.random.normal(ks[0], (B, N, C), dtype=jnp.float32)

    # Deterministic synthetic parameters (shapes match the nn.Module __init__).
    xavier_uv = math.sqrt(6.0 / (C + 2 * E + S))
    xavier_o = math.sqrt(1.0 / E)
    params = {
        'w': jax.random.uniform(ks[1], (2 * N - 1,), dtype=jnp.float32),
        'w_uv': jax.random.uniform(ks[2], (C, 2 * E + S), dtype=jnp.float32,
                                   minval=-xavier_uv, maxval=xavier_uv),
        'gamma': jax.random.uniform(ks[3], (2, S), dtype=jnp.float32),
        'beta': jax.random.uniform(ks[4], (2, S), dtype=jnp.float32),
        'w_o': jax.random.uniform(ks[5], (E, C), dtype=jnp.float32,
                                  minval=-xavier_o, maxval=xavier_o),
        'ln_g': jnp.ones((1, 1), dtype=jnp.float32),
        'res_scale': jnp.ones((1, C), dtype=jnp.float32),
    }

    out = rtmcc_block(x, params)
    out = jax.block_until_ready(out)

    ref = rtmcc_reference(x, params)
    assert out.shape == (B, N, C)
    assert jnp.allclose(out, ref, atol=1e-4, rtol=1e-4), (
        f"max abs err {jnp.max(jnp.abs(out - ref))}")

    print("KERNEL_OK")
</pallas_src>

<mosaic_0001>
module attributes {stable_mosaic.version = 11 : i64} {
  func.func @rtmcc_kernel(%arg0: memref<16x16xf32, #tpu.memory_space<vmem>>, %arg1: memref<16x96xf32, #tpu.memory_space<vmem>>, %arg2: memref<4x32xf32, #tpu.memory_space<vmem>>, %arg3: memref<2x16x16xf32, #tpu.memory_space<vmem>>, %arg4: memref<32x16xf32, #tpu.memory_space<vmem>>, %arg5: memref<1x16xf32, #tpu.memory_space<vmem>>, %arg6: memref<16x16xf32, #tpu.memory_space<vmem>>) attributes {dimension_semantics = [], scalar_prefetch = 0 : i64, scratch_operands = 0 : i64, tpu.core_type = #tpu.core_type<tc>} {
    %c0 = arith.constant 0 : index
    %c0_0 = arith.constant 0 : index
    %0 = vector.load %arg0[%c0, %c0_0] : memref<16x16xf32, #tpu.memory_space<vmem>>, vector<16x16xf32>
    %1 = arith.mulf %0, %0 : vector<16x16xf32>
    %cst = arith.constant dense<0.000000e+00> : vector<16xf32>
    %2 = vector.multi_reduction <add>, %1, %cst [1] : vector<16x16xf32> to vector<16xf32>
    %3 = vector.shape_cast %2 : vector<16xf32> to vector<16x1xf32>
    %4 = math.rsqrt %3 : vector<16x1xf32>
    %cst_1 = arith.constant 4.000000e+00 : f32
    %5 = vector.broadcast %cst_1 : f32 to vector<16x1xf32>
    %6 = arith.mulf %4, %5 : vector<16x1xf32>
    %cst_2 = arith.constant 1.000000e+05 : f32
    %7 = vector.broadcast %cst_2 : f32 to vector<16x1xf32>
    %8 = arith.minimumf %6, %7 : vector<16x1xf32>
    %9 = vector.broadcast %8 : vector<16x1xf32> to vector<16x16xf32>
    %10 = arith.mulf %0, %9 : vector<16x16xf32>
    %c0_3 = arith.constant 0 : index
    %c0_4 = arith.constant 0 : index
    %11 = vector.load %arg1[%c0_3, %c0_4] : memref<16x96xf32, #tpu.memory_space<vmem>>, vector<16x96xf32>
    %cst_5 = arith.constant dense<0.000000e+00> : vector<16x96xf32>
    %12 = tpu.matmul %10, %11, %cst_5 {dimension_numbers = #tpu.dot_dimension_numbers<[1], [0], [0], [1], [0, 0, 1, 1], [], []>} : vector<16x16xf32>, vector<16x96xf32>, vector<16x96xf32> -> vector<16x96xf32>
    %13 = arith.negf %12 : vector<16x96xf32>
    %14 = math.exp %13 : vector<16x96xf32>
    %cst_6 = arith.constant 1.000000e+00 : f32
    %15 = vector.broadcast %cst_6 : f32 to vector<16x96xf32>
    %16 = arith.addf %15, %14 : vector<16x96xf32>
    %17 = arith.divf %15, %16 : vector<16x96xf32>
    %18 = arith.mulf %12, %17 : vector<16x96xf32>
    %19 = vector.extract_strided_slice %18 {offsets = [0, 0], sizes = [16, 32], strides = [1, 1]} : vector<16x96xf32> to vector<16x32xf32>
    %20 = vector.extract_strided_slice %18 {offsets = [0, 32], sizes = [16, 32], strides = [1, 1]} : vector<16x96xf32> to vector<16x32xf32>
    %21 = vector.extract_strided_slice %18 {offsets = [0, 64], sizes = [16, 32], strides = [1, 1]} : vector<16x96xf32> to vector<16x32xf32>
    %c0_7 = arith.constant 0 : index
    %c0_8 = arith.constant 0 : index
    %22 = vector.load %arg2[%c0_7, %c0_8] : memref<4x32xf32, #tpu.memory_space<vmem>>, vector<4x32xf32>
    %23 = vector.extract_strided_slice %22 {offsets = [0, 0], sizes = [1, 32], strides = [1, 1]} : vector<4x32xf32> to vector<1x32xf32>
    %24 = vector.broadcast %23 : vector<1x32xf32> to vector<16x32xf32>
    %25 = arith.mulf %21, %24 : vector<16x32xf32>
    %26 = vector.extract_strided_slice %22 {offsets = [1, 0], sizes = [1, 32], strides = [1, 1]} : vector<4x32xf32> to vector<1x32xf32>
    %27 = vector.broadcast %26 : vector<1x32xf32> to vector<16x32xf32>
    %28 = arith.addf %25, %27 : vector<16x32xf32>
    %29 = vector.extract_strided_slice %22 {offsets = [2, 0], sizes = [1, 32], strides = [1, 1]} : vector<4x32xf32> to vector<1x32xf32>
    %30 = vector.broadcast %29 : vector<1x32xf32> to vector<16x32xf32>
    %31 = arith.mulf %21, %30 : vector<16x32xf32>
    %32 = vector.extract_strided_slice %22 {offsets = [3, 0], sizes = [1, 32], strides = [1, 1]} : vector<4x32xf32> to vector<1x32xf32>
    %33 = vector.broadcast %32 : vector<1x32xf32> to vector<16x32xf32>
    %34 = arith.addf %31, %33 : vector<16x32xf32>
    %c0_9 = arith.constant 0 : index
    %c0_10 = arith.constant 0 : index
    %c0_11 = arith.constant 0 : index
    %35 = vector.load %arg3[%c0_9, %c0_10, %c0_11] : memref<2x16x16xf32, #tpu.memory_space<vmem>>, vector<1x16x16xf32>
    %36 = vector.shape_cast %35 : vector<1x16x16xf32> to vector<16x16xf32>
    %c1 = arith.constant 1 : index
    %c0_12 = arith.constant 0 : index
    %c0_13 = arith.constant 0 : index
    %37 = vector.load %arg3[%c1, %c0_12, %c0_13] : memref<2x16x16xf32, #tpu.memory_space<vmem>>, vector<1x16x16xf32>
    %38 = vector.shape_cast %37 : vector<1x16x16xf32> to vector<16x16xf32>
    "tpu.trace_start"() <{level = 10 : i32, message = "ns,ms->nm"}> : () -> ()
    %cst_14 = arith.constant dense<0.000000e+00> : vector<16x16xf32>
    %39 = tpu.matmul %28, %34, %cst_14 {dimension_numbers = #tpu.dot_dimension_numbers<[1], [1], [0], [0], [0, 0, 1, 0], [], []>} : vector<16x32xf32>, vector<16x32xf32>, vector<16x16xf32> -> vector<16x16xf32>
    "tpu.trace_stop"() : () -> ()
    %40 = arith.addf %39, %36 : vector<16x16xf32>
    %cst_15 = arith.constant 0.000000e+00 : f32
    %41 = vector.broadcast %cst_15 : f32 to vector<16x16xf32>
    %42 = arith.maximumf %40, %41 : vector<16x16xf32>
    %43 = arith.mulf %42, %42 : vector<16x16xf32>
    %44 = arith.mulf %43, %38 : vector<16x16xf32>
    %cst_16 = arith.constant dense<0.000000e+00> : vector<16x32xf32>
    %45 = tpu.matmul %44, %20, %cst_16 {dimension_numbers = #tpu.dot_dimension_numbers<[1], [0], [0], [1], [0, 0, 1, 1], [], []>} : vector<16x16xf32>, vector<16x32xf32>, vector<16x32xf32> -> vector<16x32xf32>
    %46 = arith.mulf %19, %45 : vector<16x32xf32>
    %c0_17 = arith.constant 0 : index
    %c0_18 = arith.constant 0 : index
    %47 = vector.load %arg4[%c0_17, %c0_18] : memref<32x16xf32, #tpu.memory_space<vmem>>, vector<32x16xf32>
    %cst_19 = arith.constant dense<0.000000e+00> : vector<16x16xf32>
    %48 = tpu.matmul %46, %47, %cst_19 {dimension_numbers = #tpu.dot_dimension_numbers<[1], [0], [0], [1], [0, 0, 1, 1], [], []>} : vector<16x32xf32>, vector<32x16xf32>, vector<16x16xf32> -> vector<16x16xf32>
    %c0_20 = arith.constant 0 : index
    %c0_21 = arith.constant 0 : index
    %49 = vector.load %arg5[%c0_20, %c0_21] : memref<1x16xf32, #tpu.memory_space<vmem>>, vector<1x16xf32>
    %50 = vector.broadcast %49 : vector<1x16xf32> to vector<16x16xf32>
    %51 = arith.mulf %0, %50 : vector<16x16xf32>
    %52 = arith.addf %51, %48 : vector<16x16xf32>
    %c0_22 = arith.constant 0 : index
    %c0_23 = arith.constant 0 : index
    %53 = vector.load %arg6[%c0_22, %c0_23] : memref<16x16xf32, #tpu.memory_space<vmem>>, vector<16x16xf32>
    tpu.vector_store %arg6[%c0_22, %c0_23], %52 {strides = array<i32>} : memref<16x16xf32, #tpu.memory_space<vmem>>, vector<16x16xf32>,
    return
  }
}

</mosaic_0001>

<bundles_post_ra>
// kernel: tpu_custom_call.1
= control target key start
LH: loop header
LB: loop body
LE: loop exit
PB: predicated region body
PF: predicated region fallthrough
CT: control target
= control target key end

     0   :  { %11 = vsyncpa [#allocation3], 0  ;;  %s595_s0 = inlined_call_operand.vmem [shape: f32[16,16], index: 0, kind: input, shape index: {}]   ;;  %s596_s1 = inlined_call_operand.hbm [shape: f32[16,96], index: 1, kind: input, shape index: {}]   ;;  %s597_s2 = inlined_call_operand.hbm [shape: f32[4,32], index: 2, kind: input, shape index: {}]   ;;  %s598_s3 = inlined_call_operand.vmem [shape: f32[2,16,16], index: 3, kind: input, shape index: {}]   ;;  %s599_s4 = inlined_call_operand.vmem [shape: f32[32,16], index: 4, kind: input, shape index: {}]   ;;  %s600_s5 = inlined_call_operand.vmem [shape: f32[1,16], index: 5, kind: input, shape index: {}]   ;;  %s601_s6 = inlined_call_operand.hbm [shape: f32[16,16], index: 6, kind: output, shape index: {}]  }
   0x1   :  { %12 = vsyncpa [#allocation6], 0 }
   0x2   :  { %13 = vsyncpa [#allocation4], 0  ;;  %s20_s23 = sshll.u32 %s596_s1, 4  ;;  %s465_s24 = smov [#allocation2]   ;;  %s21_s23 = int_to_ptr.hbm [resolvable:$true] %s20_s23 }
   0x3   :  { %s22_s25 = sshll.u32 %s465_s24, 4  ;;  %s34_s28 = sshll.u32 %s597_s2, 4  ;;  %s23_s25 = int_to_ptr.vmem [resolvable:$true] %s22_s25  ;;  %s35_s28 = int_to_ptr.hbm [resolvable:$true] %s34_s28 }
   0x4   :  { %s466_s29 = smov 128   ;;  %s467_s30 = smov 8  }
   0x5   :  { %28 = dma.hbm_to_vmem [thread:$0]  %s21_s23, 256, %s23_s25, [#allocation3], %s466_s29, %s466_s29, %s467_s30  }
   0x6   :  { %s468_s7 = smov [#allocation5]  }
   0x7   :  { %s36_s8 = sshll.u32 %s468_s7, 4  ;;  %s37_s8 = int_to_ptr.vmem [resolvable:$true] %s36_s8 }
   0x8   :  { %39 = dma.hbm_to_vmem [thread:$0]  %s35_s28, 64, %s37_s8, [#allocation6]  }
   0x9   :  { %459 = dma.done.wait [#allocation3], 256  }
   0xa   :  { %460 = vsyncadd [#allocation3], 4294967040 }
   0xb   :  { %461 = dma.done.wait [#allocation6], 64  }
   0xc   :  { %462 = vsyncadd [#allocation6], 4294967232  ;;  %v519_v0 = vld [vmem:[%s595_s0] sm:$0xff]  ;;  %vm58_vm0 = vcmask 130048   ;;  %v526_v2 = vld [vmem:[%s595_s0 + $0x8] sm:$0xff]  ;;  %s469_s0 = smov 64  }
   0xd   :  { %v56_v1 = vmul.f32 %v519_v0, %v519_v0  ;;  %v57_v4 = vmul.f32 %v526_v2, %v526_v2  ;;  %v92_v6 = vld [vmem:[#allocation2 + $0x8] sm:$0xff]  ;;  %v91_v7 = vld [vmem:[#allocation2] sm:$0xff]  ;;  %v162_v9 = vld [vmem:[#allocation5] sm:$0xf]  ;;  %s470_s11 = smov 96   ;;  %vm208_vm15 = vcmask 261120  }
   0xe   :  { %113 = vmatpush.msra.mxu0 %v92_v6  ;;  %v177_v10 = vperm.slane %v162_v9, 2  ;;  %v163_v11 = vperm.slane %v162_v9, 0  ;;  %v184_v15 = vperm.slane %v162_v9, 3  ;;  %v170_v16 = vperm.slane %v162_v9, 1  ;;  %s334_s9 = sshll.u32 %s601_s6, 4  ;;  %s335_s9 = int_to_ptr.hbm [resolvable:$true] %s334_s9 }
   0xf   :  { %v59_v3 = vsel %vm58_vm0, %v56_v1, 0.0  ;;  %v62_v5 = vsel %vm58_vm0, %v57_v4, 0.0 }
  0x10   :  { %60 = vadd.xlane.f32.xlu0 %v59_v3  ;;  %114 = vmatpush.msra.mxu0 %v91_v7 }
  0x11   :  { %179 = vrot.lane.b32.xlu1 %v177_v10, %s469_s0  ;;  %165 = vrot.lane.b32.xlu2 %v163_v11, %s469_s0 }
  0x18   :  { %63 = vadd.xlane.f32.xlu0 %v62_v5 }
  0x19   :  { %186 = vrot.lane.b32.xlu1 %v184_v15, %s469_s0  ;;  %172 = vrot.lane.b32.xlu2 %v170_v16, %s469_s0 }
  0x6b   :  { %v166_v46 = vpop.permute.xlu2 %165 }
  0x73   :  { %v173_v62 = vpop.permute.xlu2 %172 }
  0x83   :  { %v61_v8 = vpop.xlane.xlu0 %60  ;;  %v180_v45 = vpop.permute.xlu1 %179 }
  0x84   :  { %375 = vrsqrt.f32 %v61_v8  ;;  %vm71_vm2 = vweird.f32 %v61_v8 }
  0x8a   :  { %v376_v12 = vpop.eup %375 }
  0x8b   :  { %v66_v13 = vmul.f32 %v376_v12, %v61_v8  ;;  %v64_v14 = vpop.xlane.xlu0 %63  ;;  %vm72_vm1 = vweird.f32 %v376_v12  ;;  %v187_v61 = vpop.permute.xlu1 %186 }
  0x8c   :  { %377 = vrsqrt.f32 %v64_v14  ;;  %vm73_vm3 = vmor %vm71_vm2, %vm72_vm1  ;;  %vm81_vm5 = vweird.f32 %v64_v14 }
  0x8d   :  { %v67_v17 = vmul.f32 %v376_v12, %v66_v13 }
  0x8f   :  { %v68_v18 = vmul.f32 0.5, %v67_v17 }
  0x91   :  { %v69_v19 = vsub.f32 1.5, %v68_v18 }
  0x92   :  { %v378_v20 = vpop.eup %377 }
  0x93   :  { %v70_v21 = vmul.f32 %v376_v12, %v69_v19  ;;  %v76_v22 = vmul.f32 %v378_v20, %v64_v14  ;;  %vm82_vm4 = vweird.f32 %v378_v20 }
  0x94   :  { %vm83_vm6 = vmor %vm81_vm5, %vm82_vm4 }
  0x95   :  { %v77_v23 = vmul.f32 %v378_v20, %v76_v22  ;;  %v74_v24 = vsel %vm73_vm3, %v376_v12, %v70_v21 }
  0x96   :  { %v85_v25 = vmul.f32 4.0, %v74_v24  ;;  %v287_v24 = vld [vmem:[%s599_s4 + $0x10] sm:$0xff] }
  0x97   :  { %v78_v26 = vmul.f32 0.5, %v77_v23  ;;  %v288_v23 = vld [vmem:[%s599_s4 + $0x18] sm:$0xff] }
  0x98   :  { %v87_v27 = vmin.f32 %v85_v25, 100000.0  ;;  %307 = vmatpush.msra.mxu3 %v288_v23  ;;  %v191_v25 = vld [vmem:[%s598_s3] sm:$0xff] }
  0x99   :  { %v79_v28 = vsub.f32 1.5, %v78_v26 }
  0x9a   :  { %v89_v29 = vmul.f32 %v87_v27, %v519_v0  ;;  %308 = vmatpush.msra.mxu3 %v287_v24 }
  0x9b   :  { %v80_v30 = vmul.f32 %v378_v20, %v79_v28 }
  0x9c   :  { %348 = vmatmul.msk.f32.vlgmr.msra.gmra.mxu0 %vm58_vm0, %v89_v29  ;;  %v352_v29 = vld [vmem:[%s598_s3 + $0x10] sm:$0xff] }
  0x9d   :  { %v84_v31 = vsel %vm83_vm6, %v378_v20, %v80_v30 }
  0x9e   :  { %v86_v32 = vmul.f32 4.0, %v84_v31  ;;  %v192_v31 = vld [vmem:[%s598_s3 + $0x8] sm:$0xff] }
  0xa0   :  { %v88_v33 = vmin.f32 %v86_v32, 100000.0 }
  0xa2   :  { %v90_v34 = vmul.f32 %v88_v33, %v526_v2 }
  0xa4   :  { %349 = vmatmul.msk.f32.gmra.mxu0 %vm58_vm0, %v90_v34 }
 0x119   :  { %v116_v35 = vpop.f32.mrf.mxu0 }
 0x11a   :  { %v350_v36 = vmul.f32 -1.442695, %v116_v35 }
 0x11c   :  { %379 = vpow2.f32 %v350_v36  ;;  %v353_v36 = vld [vmem:[%s598_s3 + $0x18] sm:$0xff] }
 0x121   :  { %v119_v37 = vpop.f32.mrf.mxu0 }
 0x122   :  { %v380_v38 = vpop.eup %379  ;;  %v351_v39 = vmul.f32 -1.442695, %v119_v37 }
 0x123   :  { %v128_v40 = vadd.f32 1.0, %v380_v38 }
 0x124   :  { %381 = vpow2.f32 %v351_v39  ;;  %v286_v39 = vld [vmem:[%s599_s4 + $0x8] sm:$0xff] }
 0x125   :  { %383 = vrcp.f32 %v128_v40  ;;  %v141_v48 = vand.u32 2147483648, %v128_v40  ;;  %v139_v50 = vand.u32 2147483647, %v128_v40  ;;  %vm135_vm8 = vweird.f32 %v128_v40  ;;  %309 = vmatpush.msra.mxu3 %v286_v39 }
 0x127   :  { %v142_v53 = vor.u32 1.1754944e-38, %v141_v48  ;;  %vm140_vm10 = vcmp.eq.f32.partialorder %v139_v50, 8.507059e+37 }
 0x12a   :  { %v382_v41 = vpop.eup %381 }
 0x12b   :  { %v384_v42 = vpop.eup %383  ;;  %v129_v43 = vadd.f32 1.0, %v382_v41 }
 0x12c   :  { %v131_v44 = vmul.f32 %v384_v42, %v128_v40  ;;  %vm136_vm7 = vweird.f32 %v384_v42  ;;  %v285_v40 = vld [vmem:[%s599_s4] sm:$0xff]  ;;  %s471_s4 = smov [#allocation7]  }
 0x12d   :  { %385 = vrcp.f32 %v129_v43  ;;  %vm137_vm9 = vmor %vm135_vm8, %vm136_vm7  ;;  %v154_v59 = vand.u32 2147483647, %v129_v43  ;;  %v156_v60 = vand.u32 2147483648, %v129_v43  ;;  %vm150_vm12 = vweird.f32 %v129_v43  ;;  %310 = vmatpush.msra.mxu3 %v285_v40  ;;  %s332_s7 = sshll.u32 %s471_s4, 4  ;;  %s333_s7 = int_to_ptr.vmem [resolvable:$true] %s332_s7 }
 0x12e   :  { %v132_v47 = vsub.f32 1.0, %v131_v44 }
 0x12f   :  { %v157_v7 = vor.u32 1.1754944e-38, %v156_v60  ;;  %vm155_vm14 = vcmp.eq.f32.partialorder %v154_v59, 8.507059e+37 }
 0x130   :  { %v133_v49 = vmul.f32 %v384_v42, %v132_v47 }
 0x132   :  { %v134_v51 = vadd.f32 %v384_v42, %v133_v49 }
 0x133   :  { %v386_v52 = vpop.eup %385 }
 0x134   :  { %v138_v54 = vsel %vm137_vm9, %v384_v42, %v134_v51  ;;  %v146_v55 = vmul.f32 %v386_v52, %v129_v43  ;;  %vm151_vm11 = vweird.f32 %v386_v52 }
 0x135   :  { %v143_v56 = vsel %vm140_vm10, %v142_v53, %v138_v54  ;;  %vm152_vm13 = vmor %vm150_vm12, %vm151_vm11 }
 0x136   :  { %v540_v57 = vmul.f32 %v143_v56, %v116_v35  ;;  %v147_v58 = vsub.f32 1.0, %v146_v55 }
 0x138   :  { %v148_v63 = vmul.f32 %v386_v52, %v147_v58  ;;  %v182_v1 = vmul.f32 %v180_v45, %v540_v57  ;;  %v168_v3 = vmul.f32 %v166_v46, %v540_v57 }
 0x13a   :  { %v149_v4 = vadd.f32 %v386_v52, %v148_v63  ;;  %v189_v5 = vadd.f32 %v187_v61, %v182_v1  ;;  %v175_v6 = vadd.f32 %v173_v62, %v168_v3 }
 0x13c   :  { %v153_v8 = vsel %vm152_vm13, %v386_v52, %v149_v4  ;;  %204 = vrot.lane.b32.xlu1 %v189_v5, %s469_s0  ;;  %198 = vrot.lane.b32.xlu2 %v175_v6, %s469_s0 }
 0x13d   :  { %v158_v9 = vsel %vm155_vm14, %v157_v7, %v153_v8 }
 0x13e   :  { %v161_v10 = vmul.f32 %v158_v9, %v119_v37 }
 0x140   :  { %v183_v11 = vmul.f32 %v180_v45, %v161_v10  ;;  %v169_v12 = vmul.f32 %v166_v46, %v161_v10  ;;  %v369_v15 = vpack.i.bf16 %v540_v57, %v161_v10  ;;  %v374_v45 = vld [vmem:[%s600_s5] ss:$0 sm:$0xff] }
 0x141   :  { %v322_v46 = vmul.f32 %v374_v45, %v519_v0  ;;  %v323_v49 = vmul.f32 %v374_v45, %v526_v2 }
 0x142   :  { %v190_v13 = vadd.f32 %v187_v61, %v183_v11  ;;  %v176_v14 = vadd.f32 %v173_v62, %v169_v12 }
 0x144   :  { %370 = vrot.lane.b32.xlu2 %v369_v15, %s470_s11  ;;  %206 = vrot.lane.b32.xlu0 %v190_v13, %s469_s0 }
 0x145   :  { %200 = vrot.lane.b32.xlu1 %v176_v14, %s469_s0 }
 0x196   :  { %v199_v16 = vpop.permute.xlu2 %198 }
 0x19e   :  { %v371_v17 = vpop.permute.xlu2 %370 }
 0x19f   :  { %v372_v18 = vunpack.i.l.bf16 %v371_v17  ;;  %v373_v19 = vunpack.i.h.bf16 %v371_v17 }
 0x1a1   :  { %274 = vmatpush.msra.mxu2 %v372_v18 }
 0x1a3   :  { %275 = vmatpush.msra.mxu2 %v373_v19 }
 0x1ae   :  { %v205_v21 = vpop.permute.xlu1 %204 }
 0x1b6   :  { %v207_v20 = vpop.permute.xlu0 %206 }
 0x1b7   :  { %354 = vmatpush.xpose.msk.msra.mxu1 %vm208_vm15, %v207_v20  ;;  %v201_v22 = vpop.permute.xlu1 %200 }
 0x1bb   :  { %355 = vmatpush.xpose.msk.msra.mxu1 %vm208_vm15, %v205_v21 }
 0x1be   :  { %356 = vmatmul.msk.f32.vlgmr.msra.gmra.mxu1 %vm208_vm15, %v199_v16 }
 0x1c6   :  { %357 = vmatmul.msk.f32.gmra.mxu1 %vm208_vm15, %v201_v22 }
 0x23b   :  { %v234_v26 = vpop.f32.mrf.mxu1 }
 0x23c   :  { %v235_v27 = vadd.f32 %v234_v26, %v191_v25 }
 0x23e   :  { %v240_v28 = vmax.f32 %v235_v27, 0.0 }
 0x240   :  { %v242_v30 = vmul.f32 %v240_v28, %v240_v28 }
 0x242   :  { %v244_v32 = vmul.f32 %v352_v29, %v242_v30 }
 0x243   :  { %v237_v33 = vpop.f32.mrf.mxu1 }
 0x244   :  { %v238_v34 = vadd.f32 %v237_v33, %v192_v31  ;;  %358 = vmatmul.msk.f32.vlgmr.msra.gmra.mxu2 %vm58_vm0, %v244_v32 }
 0x246   :  { %v241_v35 = vmax.f32 %v238_v34, 0.0 }
 0x248   :  { %v243_v37 = vmul.f32 %v241_v35, %v241_v35 }
 0x24a   :  { %v245_v38 = vmul.f32 %v353_v36, %v243_v37 }
 0x24c   :  { %359 = vmatmul.msk.f32.gmra.mxu2 %vm58_vm0, %v245_v38 }
 0x2c7   :  { %v277_v41 = vpop.f32.mrf.mxu2 }
 0x2c8   :  { %v283_v42 = vmul.f32 %v277_v41, %v540_v57 }
 0x2ca   :  { %360 = vmatmul.msk.f32.vlgmr.msra.gmra.mxu3 %vm208_vm15, %v283_v42 }
 0x2cf   :  { %v280_v43 = vpop.f32.mrf.mxu2 }
 0x2d0   :  { %v284_v44 = vmul.f32 %v280_v43, %v161_v10 }
 0x2d2   :  { %361 = vmatmul.msk.f32.gmra.mxu3 %vm208_vm15, %v284_v44 }
 0x34d   :  { %v312_v47 = vpop.f32.mrf.mxu3 }
 0x34e   :  { %v324_v48 = vadd.f32 %v322_v46, %v312_v47 }
 0x350   :  { %326 = vst.msk [vmem:[#allocation7] sm:$0xff] %vm58_vm0, %v324_v48 }
 0x355   :  { %v315_v50 = vpop.f32.mrf.mxu3 }
 0x356   :  { %v325_v51 = vadd.f32 %v323_v49, %v315_v50 }
 0x358   :  { %327 = vst.msk [vmem:[#allocation7 + $0x8] sm:$0xff] %vm58_vm0, %v325_v51 }
 0x359   :  { %340 = dma.vmem_to_hbm [thread:$0]  %s333_s7, 256, %s335_s9, [#allocation4], %s466_s29, %s466_s29, %s467_s30  }
 0x35a   :  { %463 = dma.done.wait [#allocation4], 256  }
 0x35b   :  { %464 = vsyncadd [#allocation4], 4294967040 }
 0x35c   :  { %345 = vsyncpa [#allocation3], 1 }
 0x35d   :  { %346 = vsyncpa [#allocation6], 1 }
 0x35e   :  { %347 = vsyncpa [#allocation4], 1 }

</bundles_post_ra>
